<compile_context>
chip_gen: v5e
topology: v5e:2x2
jax: 0.10.0
libtpu: 0.0.40
codegen_flags: <defaults>
</compile_context>

<pallas_src>
import math

import jax
import jax.numpy as jnp
from jax.experimental import pallas as pl
from jax.experimental.pallas import tpu as pltpu

LN_EPS = 1e-5  # torch.nn.LayerNorm default


# ---------------------------------------------------------------------------
# Pass 1: h = sqrt(scale) * LayerNorm1(x), stored bf16 (serves as Q, K, V).
# ---------------------------------------------------------------------------
def _ln1_kernel(x_ref, g_ref, b_ref, o_ref):
    xs = x_ref[0]                                          # (tq, C) f32
    mu = jnp.mean(xs, axis=-1, keepdims=True)
    xc = xs - mu
    var = jnp.mean(xc * xc, axis=-1, keepdims=True)
    h = xc * jax.lax.rsqrt(var + LN_EPS)
    o_ref[0] = (h * g_ref[...] + b_ref[...]).astype(o_ref.dtype)


# ---------------------------------------------------------------------------
# Pass 2: attention + residual + LN2 + MLP + residual, one query tile / step.
# ---------------------------------------------------------------------------
def _make_block_kernel(*, tq, n_real, n_pad, dim, hidden, hidden_chunk,
                       post_scale):
    post_scale = float(post_scale)

    def kernel(x_ref, h_ref, g2_ref, b2_ref, w1_ref, c1_ref, w2_ref, c2_ref,
               o_ref):
        qi = pl.program_id(1)
        row0 = pl.multiple_of(qi * tq, tq)

        kv = h_ref[0]                                      # (n_pad, C) bf16
        hq = h_ref[0, pl.ds(row0, tq), :]                  # (tq, C)   bf16

        # scores: contract last dims -> no explicit transpose; f32 accumulate.
        s = jax.lax.dot_general(hq, kv, (((1,), (1,)), ((), ())),
                                preferred_element_type=jnp.float32)
        if n_pad != n_real:                                # mask padded keys
            col = jax.lax.broadcasted_iota(jnp.int32, s.shape, 1)
            s = jnp.where(col < n_real, s, -jnp.inf)

        # Deferred-normalization softmax: PV matmul on unnormalized exp(),
        # then one (tq,1) reciprocal (EUP) that also undoes the sqrt(scale)
        # folded into the V rows.
        s = s - jnp.max(s, axis=-1, keepdims=True)
        p = jnp.exp(s)
        l = jnp.sum(p, axis=-1, keepdims=True)             # (tq, 1)
        # TODO(synk): for very long sequences (N >~ 4k) switch to an online-
        # softmax loop over KV chunks to cap the (tq, N) working set.
        a = jnp.dot(p.astype(jnp.bfloat16), kv,
                    preferred_element_type=jnp.float32)    # (tq, C)
        a = a * (pl.reciprocal(l, approx=True) * post_scale)

        x1 = x_ref[0] + a                                  # residual 1 (f32)

        # LN2 (per query tile)
        mu2 = jnp.mean(x1, axis=-1, keepdims=True)
        xc2 = x1 - mu2
        var2 = jnp.mean(xc2 * xc2, axis=-1, keepdims=True)
        h2 = xc2 * jax.lax.rsqrt(var2 + LN_EPS)
        h2 = (h2 * g2_ref[...] + b2_ref[...]).astype(jnp.bfloat16)

        # MLP: fc1 -> exact GELU -> fc2, chunked over the hidden dimension so
        # the live f32 intermediate is (tq, hidden_chunk), not (tq, hidden).
        acc = jnp.zeros((tq, dim), jnp.float32)
        for off in range(0, hidden, hidden_chunk):
            m = jnp.dot(h2, w1_ref[:, off:off + hidden_chunk],
                        preferred_element_type=jnp.float32)
            m = m + c1_ref[:, off:off + hidden_chunk]
            m = jax.nn.gelu(m, approximate=False)          # nn.GELU default
            acc = acc + jnp.dot(m.astype(jnp.bfloat16),
                                w2_ref[off:off + hidden_chunk, :],
                                preferred_element_type=jnp.float32)
        acc = acc + c2_ref[...]

        o_ref[0] = (x1 + acc).astype(o_ref.dtype)          # residual 2

    return kernel


# ---------------------------------------------------------------------------
# Tiling / resource helpers
# ---------------------------------------------------------------------------
def _choose_tiling(n, target=256):
    """Return (tq, n_pad).  tq divides n_pad; n_pad >= n (padding => masking)."""
    if n <= target:
        return n, n
    for tq in range(target - target % 128, 127, -128):     # multiples of 128
        if n % tq == 0:
            return tq, n
    for tq in range(target - target % 16, 15, -16):        # multiples of 16
        if n % tq == 0:
            return tq, n
    n_pad = ((n + 127) // 128) * 128                        # pad, mask keys
    return 128, n_pad


def _choose_hidden_chunk(h, target=512):
    if h <= target:
        return h
    for hc in range(target - target % 128, 127, -128):
        if h % hc == 0:
            return hc
    return h


def _vmem_limit_bytes():
    # v7x: 64 MiB physical per-core VMEM; v5e/v6e: 128 MiB.
    try:
        cap = int(pltpu.get_tpu_info().vmem_capacity_bytes)
    except Exception:
        cap = 64 * 1024 * 1024                              # conservative
    return min(cap - 8 * 1024 * 1024, 100 * 1024 * 1024)


# ---------------------------------------------------------------------------
# Wrapper
# ---------------------------------------------------------------------------
def block_forward(x, params, num_heads, *, query_tile=None):
    """x: (B, N, C) float32.  params: dict of weights (see init_params)."""
    B, N, C = x.shape
    H = params["w1"].shape[1]
    n_state = C // num_heads
    scale = 1.0 / math.sqrt(n_state)
    sqrt_scale = math.sqrt(scale)

    if query_tile is None:
        tq, n_pad = _choose_tiling(N)
    else:
        tq = query_tile
        n_pad = pl.cdiv(N, tq) * tq
    hc = _choose_hidden_chunk(H)

    x_in = x if n_pad == N else jnp.pad(x, ((0, 0), (0, n_pad - N), (0, 0)))

    # Fold sqrt(scale) into LN1's affine (tiny (1,C) op) so h' = sqrt(scale)*h
    # serves as pre-scaled Q and K; the V-side sqrt(scale) is undone by the
    # per-row post_scale inside the kernel.
    g1 = (params["g1"] * sqrt_scale).astype(jnp.float32)
    b1 = (params["b1"] * sqrt_scale).astype(jnp.float32)
    # MXU operands in bf16 (f32 accumulation in-kernel).
    w1 = params["w1"].astype(jnp.bfloat16)
    w2 = params["w2"].astype(jnp.bfloat16)

    # TODO(synk): for production, C should be padded to a multiple of 128 for
    # lane-dense output stores (needs masked LayerNorm statistics).

    vmem_limit = _vmem_limit_bytes()
    const = lambda: pl.BlockSpec(memory_space=pltpu.MemorySpace.VMEM)
    grid = (B, n_pad // tq)

    # ---- pass 1: h = sqrt(scale) * LayerNorm1(x), bf16 ---------------------
    h = pl.pallas_call(
        _ln1_kernel,
        out_shape=jax.ShapeDtypeStruct((B, n_pad, C), jnp.bfloat16),
        grid_spec=pltpu.PrefetchScalarGridSpec(
            num_scalar_prefetch=0,
            grid=grid,
            in_specs=[pl.BlockSpec((1, tq, C), lambda b, qi: (b, qi, 0)),
                      const(), const()],
            out_specs=pl.BlockSpec((1, tq, C), lambda b, qi: (b, qi, 0)),
        ),
        compiler_params=pltpu.CompilerParams(
            dimension_semantics=("parallel", "parallel"),
            vmem_limit_bytes=vmem_limit),
    )(x_in, g1, b1)

    # ---- pass 2: attention + residual + LN2 + MLP + residual ---------------
    kernel = _make_block_kernel(tq=tq, n_real=N, n_pad=n_pad, dim=C, hidden=H,
                                hidden_chunk=hc, post_scale=1.0 / sqrt_scale)

    cost = pl.CostEstimate(
        flops=int(B * (4 * n_pad * n_pad * C + 4 * n_pad * C * H)),
        transcendentals=int(B * (n_pad * n_pad + n_pad * H)),
        bytes_accessed=int(B * n_pad * C * (4 + 2 + 4) + 2 * C * H * 2),
    )

    out = pl.pallas_call(
        kernel,
        out_shape=jax.ShapeDtypeStruct((B, n_pad, C), x.dtype),
        grid_spec=pltpu.PrefetchScalarGridSpec(
            num_scalar_prefetch=0,
            grid=grid,
            in_specs=[
                # per-tile residual rows (small, pipelined)
                pl.BlockSpec((1, tq, C), lambda b, qi: (b, qi, 0)),
                # full-sequence bf16 K/V; block index constant across the
                # query-tile axis -> DMA'd once per batch element
                pl.BlockSpec((1, n_pad, C), lambda b, qi: (b, 0, 0)),
                const(),  # norm2 gamma (1, C)
                const(),  # norm2 beta  (1, C)
                const(),  # fc1 weight  (C, H) bf16
                const(),  # fc1 bias    (1, H)
                const(),  # fc2 weight  (H, C) bf16
                const(),  # fc2 bias    (1, C)
            ],
            out_specs=pl.BlockSpec((1, tq, C), lambda b, qi: (b, qi, 0)),
        ),
        compiler_params=pltpu.CompilerParams(
            dimension_semantics=("parallel", "parallel"),
            vmem_limit_bytes=vmem_limit),
        cost_estimate=cost,
    )(x_in, h, params["g2"], params["b2"], w1, params["c1"], w2, params["c2"])

    return out if n_pad == N else out[:, :N, :]


# ---------------------------------------------------------------------------
# Pure-JAX (f32) reference mirroring the PyTorch Block forward
# ---------------------------------------------------------------------------
def block_reference(x, params, num_heads):
    B, N, C = x.shape
    scale = 1.0 / math.sqrt(C // num_heads)

    def ln(v, g, b):
        mu = jnp.mean(v, axis=-1, keepdims=True)
        var = jnp.mean((v - mu) ** 2, axis=-1, keepdims=True)
        return (v - mu) * jax.lax.rsqrt(var + LN_EPS) * g + b

    h = ln(x, params["g1"], params["b1"])
    w = jnp.einsum("bnc,bmc->bnm", h, h) * scale
    p = jax.nn.softmax(w, axis=-1)
    a = jnp.einsum("bnm,bmc->bnc", p, h)
    x1 = x + a
    h2 = ln(x1, params["g2"], params["b2"])
    m = jax.nn.gelu(h2 @ params["w1"] + params["c1"], approximate=False)
    m = m @ params["w2"] + params["c2"]
    return x1 + m


def init_params(key, dim, hidden):
    ks = jax.random.split(key, 4)
    g1 = jnp.ones((1, dim), jnp.float32)
    b1 = jnp.zeros((1, dim), jnp.float32)
    g2 = jnp.ones((1, dim), jnp.float32)
    b2 = jnp.zeros((1, dim), jnp.float32)
    lim1 = 1.0 / math.sqrt(dim)
    lim2 = 1.0 / math.sqrt(hidden)
    w1 = jax.random.uniform(ks[0], (dim, hidden), jnp.float32, -lim1, lim1)
    c1 = jax.random.uniform(ks[1], (1, hidden), jnp.float32, -lim1, lim1)
    w2 = jax.random.uniform(ks[2], (hidden, dim), jnp.float32, -lim2, lim2)
    c2 = jax.random.uniform(ks[3], (1, dim), jnp.float32, -lim2, lim2)
    return dict(g1=g1, b1=b1, g2=g2, b2=b2, w1=w1, c1=c1, w2=w2, c2=c2)


if __name__ == "__main__":
    B, N, C = 2, 8, 32        # batch, seq, embedding (small demo shapes)
    num_heads = 4
    mlp_hidden_dim = 64

    key = jax.random.PRNGKey(0)
    kx, kp = jax.random.split(key)
    x = jax.random.normal(kx, (B, N, C), jnp.float32)
    params = init_params(kp, C, mlp_hidden_dim)

    out = jax.block_until_ready(block_forward(x, params, num_heads))
    ref = block_reference(x, params, num_heads)

    assert out.shape == (B, N, C)
    # bf16 MXU operands + approx softmax reciprocal give ~1e-2-level deviation
    # from the exact-f32 reference; check aggregate and element-wise error.
    rel_err = float(jnp.linalg.norm(out - ref) / jnp.linalg.norm(ref))
    assert rel_err < 2e-2, rel_err
    assert jnp.allclose(out, ref, atol=1e-1, rtol=1e-1), \
        float(jnp.max(jnp.abs(out - ref)))

    print("KERNEL_OK")
</pallas_src>

<mosaic_0001>
module attributes {stable_mosaic.version = 11 : i64} {
  func.func @_ln1_kernel(%arg0: i32, %arg1: i32, %arg2: memref<1x8x32xf32, #tpu.memory_space<vmem>>, %arg3: memref<1x32xf32, #tpu.memory_space<vmem>>, %arg4: memref<1x32xf32, #tpu.memory_space<vmem>>, %arg5: memref<1x8x32xbf16, #tpu.memory_space<vmem>>) attributes {dimension_semantics = [#tpu.dimension_semantics<parallel>, #tpu.dimension_semantics<parallel>], iteration_bounds = array<i64: 2, 1>, scalar_prefetch = 0 : i64, scratch_operands = 0 : i64, tpu.core_type = #tpu.core_type<tc>, window_params = [{transform_indices = @transform_0, window_bounds = array<i64: 1, 8, 32>}, {pipeline_mode = #tpu.pipeline_mode<synchronous>, transform_indices = @transform_1, window_bounds = array<i64: 1, 32>}, {pipeline_mode = #tpu.pipeline_mode<synchronous>, transform_indices = @transform_2, window_bounds = array<i64: 1, 32>}, {transform_indices = @transform_3, window_bounds = array<i64: 1, 8, 32>}]} {
    %c0 = arith.constant 0 : index
    %c0_0 = arith.constant 0 : index
    %c0_1 = arith.constant 0 : index
    %0 = vector.load %arg2[%c0, %c0_0, %c0_1] : memref<1x8x32xf32, #tpu.memory_space<vmem>>, vector<1x8x32xf32>
    %1 = vector.shape_cast %0 : vector<1x8x32xf32> to vector<8x32xf32>
    %cst = arith.constant dense<0.000000e+00> : vector<8xf32>
    %2 = vector.multi_reduction <add>, %1, %cst [1] : vector<8x32xf32> to vector<8xf32>
    %3 = vector.shape_cast %2 : vector<8xf32> to vector<8x1xf32>
    %cst_2 = arith.constant 3.200000e+01 : f32
    %4 = vector.broadcast %cst_2 : f32 to vector<8x1xf32>
    %5 = arith.divf %3, %4 : vector<8x1xf32>
    %6 = vector.broadcast %5 : vector<8x1xf32> to vector<8x32xf32>
    %7 = arith.subf %1, %6 : vector<8x32xf32>
    %8 = arith.mulf %7, %7 : vector<8x32xf32>
    %cst_3 = arith.constant dense<0.000000e+00> : vector<8xf32>
    %9 = vector.multi_reduction <add>, %8, %cst_3 [1] : vector<8x32xf32> to vector<8xf32>
    %10 = vector.shape_cast %9 : vector<8xf32> to vector<8x1xf32>
    %cst_4 = arith.constant 3.200000e+01 : f32
    %11 = vector.broadcast %cst_4 : f32 to vector<8x1xf32>
    %12 = arith.divf %10, %11 : vector<8x1xf32>
    %cst_5 = arith.constant 9.99999974E-6 : f32
    %13 = vector.broadcast %cst_5 : f32 to vector<8x1xf32>
    %14 = arith.addf %12, %13 : vector<8x1xf32>
    %15 = math.rsqrt %14 : vector<8x1xf32>
    %16 = vector.broadcast %15 : vector<8x1xf32> to vector<8x32xf32>
    %17 = arith.mulf %7, %16 : vector<8x32xf32>
    %c0_6 = arith.constant 0 : index
    %c0_7 = arith.constant 0 : index
    %18 = vector.load %arg3[%c0_6, %c0_7] : memref<1x32xf32, #tpu.memory_space<vmem>>, vector<1x32xf32>
    %19 = vector.broadcast %18 : vector<1x32xf32> to vector<8x32xf32>
    %20 = arith.mulf %17, %19 : vector<8x32xf32>
    %c0_8 = arith.constant 0 : index
    %c0_9 = arith.constant 0 : index
    %21 = vector.load %arg4[%c0_8, %c0_9] : memref<1x32xf32, #tpu.memory_space<vmem>>, vector<1x32xf32>
    %22 = vector.broadcast %21 : vector<1x32xf32> to vector<8x32xf32>
    %23 = arith.addf %20, %22 : vector<8x32xf32>
    %24 = arith.truncf %23 : vector<8x32xf32> to vector<8x32xbf16>
    %c0_10 = arith.constant 0 : index
    %c0_11 = arith.constant 0 : index
    %c0_12 = arith.constant 0 : index
    %25 = vector.load %arg5[%c0_10, %c0_11, %c0_12] : memref<1x8x32xbf16, #tpu.memory_space<vmem>>, vector<1x8x32xbf16>
    %26 = vector.shape_cast %25 : vector<1x8x32xbf16> to vector<8x32xbf16>
    %27 = vector.shape_cast %24 : vector<8x32xbf16> to vector<1x8x32xbf16>
    tpu.vector_store %arg5[%c0_10, %c0_11, %c0_12], %27 {strides = array<i32>} : memref<1x8x32xbf16, #tpu.memory_space<vmem>>, vector<1x8x32xbf16>,
    return
  }
  func.func @transform_0(%arg0: i32, %arg1: i32) -> (i32, i32, i32) {
    %c0_i32 = arith.constant 0 : i32
    %c0_i32_0 = arith.constant 0 : i32
    return %arg0, %arg1, %c0_i32 : i32, i32, i32
  }
  func.func @transform_1(%arg0: i32, %arg1: i32) -> (i32, i32) {
    %c0_i32 = arith.constant 0 : i32
    %c0_i32_0 = arith.constant 0 : i32
    %c0_i32_1 = arith.constant 0 : i32
    return %c0_i32, %c0_i32_0 : i32, i32
  }
  func.func @transform_2(%arg0: i32, %arg1: i32) -> (i32, i32) {
    %c0_i32 = arith.constant 0 : i32
    %c0_i32_0 = arith.constant 0 : i32
    %c0_i32_1 = arith.constant 0 : i32
    return %c0_i32, %c0_i32_0 : i32, i32
  }
  func.func @transform_3(%arg0: i32, %arg1: i32) -> (i32, i32, i32) {
    %c0_i32 = arith.constant 0 : i32
    %c0_i32_0 = arith.constant 0 : i32
    return %arg0, %arg1, %c0_i32 : i32, i32, i32
  }
}

</mosaic_0001>

<bundles_post_ra>
// kernel: tpu_custom_call.1
= control target key start
LH: loop header
LB: loop body
LE: loop exit
PB: predicated region body
PF: predicated region fallthrough
CT: control target
= control target key end

     0   :  { %8 = vsyncpa [#allocation3], 0  ;;  %s791_s0 = inlined_call_operand.hbm [shape: f32[2,8,32], index: 0, kind: input, shape index: {}]   ;;  %s792_s1 = inlined_call_operand.hbm [shape: f32[1,32], index: 1, kind: input, shape index: {}]   ;;  %s793_s2 = inlined_call_operand.vmem [shape: f32[1,32], index: 2, kind: input, shape index: {}]   ;;  %s794_s3 = inlined_call_operand.hbm [shape: bf16[2,8,32], index: 3, kind: output, shape index: {}]  }
   0x1   :  { %10 = vsyncpa [#allocation3 + $0x1], 0 }
   0x2   :  { %11 = vsyncpa [#allocation6], 0 }
   0x3   :  { %12 = vsyncpa [#allocation4], 0 }
   0x4   :  { %14 = vsyncpa [#allocation4 + $0x1], 0  ;;  %s636_s12 = smov 0   ;;  %s638_s13 = smov 0  }
   0x5   :  { %s640_s14 = smov 0   ;;  %s642_s15 = smov 0  }
   0x6   :  { %s644_s16 = smov 0   ;;  %s646_s17 = smov 0  }
   0x7 LB: > { %s371_s18 = sadd.s32 4294967295, %s612_s17   ;;  %s372_s19 = sadd.s32 4294967294, %s612_s17   ;;  %s612_s17 = sphi %s646_s17, %s20_s17   ;;  %s608_s16 = sphi %s644_s16, %s806_s16   ;;  %s604_s15 = sphi %s642_s15, %s805_s15   ;;  %s600_s14 = sphi %s640_s14, %s804_s14   ;;  %s596_s13 = sphi %s638_s13, %s803_s13   ;;  %s592_s12 = sphi %s636_s12, %s802_s12  }
   0x8   : > { %p54_p0 = scmp.ne.s32.totalorder %s596_s13, %s592_s12  ;;  %p670_p1 = scmp.eq.s32.totalorder %s371_s18, 0 }
   0x9   : > { %p674_p2 = scmp.eq.s32.totalorder %s371_s18, 1  ;;  %p128_p3 = scmp.eq.s32.totalorder %s372_s19, 1 }
   0xa   : > { %p680_p4 = por %p670_p1, %p54_p0  ;;  %p373_p5 = scmp.ge.s32.totalorder %s612_s17, 1 }
   0xb   : > { %p685_p6 = por %p128_p3, %p54_p0  ;;  %p135_p7 = scmp.lt.s32.totalorder %s612_s17, 3 }
   0xc   : > { %s147_s26 = sshll.u32 %s792_s1, 4  ;;  %p375_p9 = scmp.ge.s32.totalorder %s612_s17, 2  ;;  %s148_s26 = int_to_ptr.hbm [resolvable:$true] %s147_s26 }
   0xd   : > { %p693_p8 = pnand %p373_p5, %p135_p7  ;;  %s614_s28 = smov [#allocation5]  }
   0xe   : > { %s149_s29 = sshll.u32 %s614_s28, 4  ;;  %s32_s30 = sadd.s32 1, %s608_s16  ;;  %s150_s29 = int_to_ptr.vmem [resolvable:$true] %s149_s29 }
   0xf   : > { %p394_p10 = pneg %p693_p8  ;;  %p34_p12 = scmp.ge.s32.totalorder %s32_s30, 2 }
  0x10   : > { %s41_s4 = sadd.s32 1, %s600_s14  ;;  %p48_p13 = scmp.ne.s32.totalorder %s600_s14, %s596_s13 }
  0x11   : > { %p395_p11 = pnand %p394_p10, %p670_p1  ;;  %p49_p0 = scmp.eq.s32.totalorder %s612_s17, 0 }
  0x12   : > { %s808_s30 = smov (%p34_p12, %s32_s30), 0  ;;  %p715_p5 = por %p674_p2, %p48_p13 }
  0x13   : > { %397 = dma.hbm_to_vmem [thread:$0]  (!%p395_p11), %s148_s26, 16, %s150_s29, [#allocation6]  }
  0x14   : > { %p709_p3 = por %p49_p0, %p48_p13  ;;  %s36_s7 = ssub.s32 %s608_s16, %s808_s30 }
  0x15   : > { %p407_p7 = scmp.lt.s32.totalorder %s612_s17, 2  ;;  %p39_p10 = scmp.eq.s32.totalorder %s36_s7, 0 }
  0x16   : > { %s163_s8 = sand.u32 1, %s600_s14   ;;  %s377_s11 = sshll.u32 %s608_s16, 3 }
  0x17   : > { %s376_s9 = sshll.u32 %s163_s8, 3  ;;  %s172_s24 = scalar_lea.hbm %s791_s0, %s377_s11 }
  0x18   : > { %s724_s10 = scalar_select %p39_p10, %s600_s14, %s41_s4  }
  0x19   : > { %s167_s25 = scalar_lea.vmem [#allocation2], %s376_s9  ;;  %s174_s21 = sshll.u32 %s172_s24, 4  ;;  %s175_s21 = int_to_ptr.hbm [resolvable:$true] %s174_s21 }
  0x1a   : > { %s176_s26 = sshll.u32 %s167_s25, 4  ;;  %p399_p2 = pnand %p407_p7, %p709_p3  ;;  %s177_s26 = int_to_ptr.vmem [resolvable:$true] %s176_s26 }
  0x1b   : > { %s164_s28 = scalar_lea.sflag [#allocation3], %s163_s8  ;;  %185 = sbr.rel (%p693_p8) target bundleno = 309 (0x135), region = 32 }
  0x1c   : > { %401 = dma.hbm_to_vmem [thread:$0]  (!%p399_p2), %s175_s21, 128, %s177_s26, %s164_s28  }
  0x1d   : > { %s735_s29 = sand.u32 (!%p693_p8), 1, %s596_s13  }
  0x1e   : > { %s379_s4 = sshll.u32 (!%p693_p8), %s735_s29, 3  ;;  %s188_s7 = scalar_lea.sflag (!%p693_p8), [#allocation3], %s735_s29 }
  0x1f   : > { %s191_s9 = scalar_lea.vmem (!%p693_p8), [#allocation2], %s379_s4 }
  0x20   : > { %579 = dma.done.wait (%p680_p4), %s188_s7, 128  }
  0x21   : > { %581 = vsyncadd (%p680_p4), %s188_s7, 4294967168 }
  0x22   : > { %583 = dma.done.wait (%p670_p1), [#allocation6], 16  }
  0x23   : > { %585 = vsyncadd (%p670_p1), [#allocation6], 4294967280  ;;  %vm221_vm0 = vcmask 261120   ;;  %v220_v0 = vld [vmem:[%s191_s9] sm:$0xff]  ;;  %v615_v2 = vmov 32.0   ;;  %s381_s20 = sshll.u32 %s735_s29, 2 }
  0x24   : > { %v222_v1 = vsel %vm221_vm0, %v220_v0, 0.0  ;;  %462 = vrcp.f32 %v615_v2  ;;  %s383_s22 = sshll.u32 %s604_s15, 2  ;;  %v460_v23 = vld [vmem:[#allocation5] ss:$0 sm:$0xff]  ;;  %v461_v25 = vld [vmem:[%s793_s2] ss:$0 sm:$0xff] }
  0x25   : > { %223 = vadd.xlane.f32.xlu0 %v222_v1  ;;  %s276_s18 = scalar_lea.hbm %s794_s3, %s383_s22  ;;  %s219_s19 = scalar_lea.vmem [#allocation7], %s381_s20  ;;  %vm262_vm5 = vcmask 257024  }
  0x26   : > { %s278_s24 = sshll.u32 %s219_s19, 4  ;;  %s280_s25 = sshll.u32 %s276_s18, 4  ;;  %s279_s24 = int_to_ptr.vmem [resolvable:$true] %s278_s24  ;;  %s281_s25 = int_to_ptr.hbm [resolvable:$true] %s280_s25 }
  0x27   : > { %s265_s15 = scalar_lea.sflag [#allocation4], %s735_s29  ;;  %s540_s26 = sshra.s32 %s281_s25, 4  ;;  %s541_s26 = int_to_ptr.hbm [resolvable:$true] %s540_s26 }
  0x28   : > { %s542_s21 = scalar_lea.hbm %s541_s26, 4  ;;  %s546_s7 = scalar_lea.hbm %s794_s3, 8 }
  0x29   : > { %p543_p1 = scmp.ne.s32.totalorder %s541_s26, %s542_s21  ;;  %p547_p11 = scmp.lt.s32.totalorder %s541_s26, %s794_s3 }
  0x2a   : > { %v463_v3 = vpop.eup %462  ;;  %p548_p12 = scmp.lt.s32.totalorder %s546_s7, %s542_s21 }
  0x2b   : > { %v226_v4 = vmul.f32 32.0, %v463_v3  ;;  %vm230_vm1 = vweird.f32 %v463_v3  ;;  %p544_p4 = pnand %p543_p1, %p715_p5 }
  0x2c   : > { %p549_p13 = por %p548_p12, %p547_p11 }
  0x2d   : > { %v227_v5 = vsub.f32 1.0, %v226_v4  ;;  %p545_p8 = pneg %p544_p4 }
  0x2f   : > { %v228_v6 = vmul.f32 %v463_v3, %v227_v5  ;;  %p550_p0 = pnand %p549_p13, %p545_p8 }
  0x31   : > { %v229_v7 = vadd.f32 %v463_v3, %v228_v6 }
  0x33   : > { %v231_v8 = vsel %vm230_vm1, %v463_v3, %v229_v7 }
  0x98   : > { %v224_v9 = vpop.xlane.xlu0 %223 }
  0x99   : > { %v232_v10 = vmul.f32 %v231_v8, %v224_v9 }
  0x9b   : > { %v233_v11 = vsub.f32 %v220_v0, %v232_v10 }
  0x9d   : > { %v234_v12 = vmul.f32 %v233_v11, %v233_v11 }
  0x9f   : > { %v235_v13 = vsel %vm221_vm0, %v234_v12, 0.0 }
  0xa0   : > { %236 = vadd.xlane.f32.xlu0 %v235_v13 }
 0x113   : > { %v237_v14 = vpop.xlane.xlu0 %236 }
 0x114   : > { %v238_v15 = vmul.f32 %v237_v14, %v231_v8 }
 0x116   : > { %v239_v16 = vadd.f32 1e-05, %v238_v15 }
 0x118   : > { %464 = vrsqrt.f32 %v239_v16  ;;  %vm246_vm3 = vweird.f32 %v239_v16 }
 0x11e   : > { %v465_v17 = vpop.eup %464 }
 0x11f   : > { %v241_v18 = vmul.f32 %v465_v17, %v239_v16  ;;  %vm247_vm2 = vweird.f32 %v465_v17 }
 0x120   : > { %vm248_vm4 = vmor %vm246_vm3, %vm247_vm2 }
 0x121   : > { %v242_v19 = vmul.f32 %v465_v17, %v241_v18 }
 0x123   : > { %v243_v20 = vmul.f32 0.5, %v242_v19 }
 0x125   : > { %v244_v21 = vsub.f32 1.5, %v243_v20 }
 0x127   : > { %v245_v22 = vmul.f32 %v465_v17, %v244_v21 }
 0x129   : > { %v249_v24 = vsel %vm248_vm4, %v465_v17, %v245_v22 }
 0x12a   : > { %v250_v26 = vmul.f32 %v249_v24, %v233_v11 }
 0x12c   : > { %v255_v27 = vmul.f32 %v460_v23, %v250_v26 }
 0x12e   : > { %v260_v28 = vadd.f32 %v461_v25, %v255_v27 }
 0x130   : > { %v261_v29 = vpack.c.bf16 %v260_v28, %v260_v28 }
 0x132   : > { %263 = vst.msk [vmem:[%s219_s19] sm:$0xf] %vm262_vm5, %v261_v29 }
 0x133   : > { %553 = shalt.err (!%p550_p0)
}
 0x134   : > { %392 = dma.vmem_to_hbm [thread:$0]  (%p715_p5), %s279_s24, 64, %s281_s25, %s265_s15  }
 0x135 PF: > { %s292_s29 = sand.u32 1, %s592_s12   ;;  %p403_p3 = pnand %p375_p9, %p685_p6 }
 0x136   : > { %s293_s22 = scalar_lea.sflag [#allocation4], %s292_s29 }
 0x137   : > { %p404_p7 = pneg %p403_p3 }
 0x139   : > { %587 = dma.done.wait (%p404_p7), %s293_s22, 64  }
 0x13a   : > { %589 = vsyncadd (%p404_p7), %s293_s22, 4294967232  ;;  %s20_s17 = sadd.s32 1, %s612_s17   ;;  %s802_s12 = smov %s596_s13 }
 0x13b   : > { %p17_p10 = scmp.ge.s32.totalorder %s20_s17, 4   ;;  %s803_s13 = smov %s600_s14 }
 0x13c   : > { %s804_s14 = smov %s724_s10  ;;  %s805_s15 = smov %s608_s16 }
 0x13d   : > { %s806_s16 = smov %s808_s30  ;;  %19 = sbr.rel (!%p17_p10) target bundleno = 7 (0x7), region = 81 }
 0x142   :  { %299 = vsyncpa [#allocation3], 1 }
 0x143   :  { %301 = vsyncpa [#allocation3 + $0x1], 1 }
 0x144   :  { %302 = vsyncpa [#allocation6], 1 }
 0x145   :  { %303 = vsyncpa [#allocation4], 1 }
 0x146   :  { %305 = vsyncpa [#allocation4 + $0x1], 1 }

</bundles_post_ra>
